<compile_context>
chip_gen: v5e
topology: v5e:2x2
jax: 0.10.0
libtpu: 0.0.40
codegen_flags: <defaults>
</compile_context>

<pallas_src>
import functools

import jax
import jax.numpy as jnp
from jax.experimental import pallas as pl
from jax.experimental.pallas import tpu as pltpu


# ------------------------------------------------------------------ pass 1: stats
def _stats_kernel(x_ref, sum_ref, sumsq_ref, acc_s, acc_q, *, hw, hw_tile):
    """Per-row sum / sum-of-squares over the HW axis (single pass over x)."""
    j = pl.program_id(1)

    @pl.when(j == 0)
    def _():
        acc_s[...] = jnp.zeros_like(acc_s)
        acc_q[...] = jnp.zeros_like(acc_q)

    x = x_ref[...].astype(jnp.float32)
    if hw % hw_tile != 0:
        # Only generated when the HW grid has a ragged last block: zero out
        # out-of-range lanes so garbage in the padded region cannot corrupt
        # the reduction (jnp.where also neutralizes NaN/Inf garbage).
        col = jax.lax.broadcasted_iota(jnp.int32, x.shape, 1)
        x = jnp.where(col < (hw - j * hw_tile), x, 0.0)

    acc_s[...] += jnp.sum(x, axis=-1, keepdims=True)
    acc_q[...] += jnp.sum(x * x, axis=-1, keepdims=True)

    @pl.when(j == pl.num_programs(1) - 1)
    def _():
        sum_ref[...] = acc_s[...]
        sumsq_ref[...] = acc_q[...]


# ----------------------------------------------------------------- pass 2: mixing
def _mix_kernel(sum_ref, sumsq_ref, mw_ref, vw_ref, gamma_ref, beta_ref,
                scale_ref, shift_ref, mean_bn_ref, var_bn_ref, *, hw, eps):
    """IN/LN/BN stats + softmax mixing, fused into per-(N,C) scale/shift."""
    s = sum_ref[...]                       # (N, C) f32
    q = sumsq_ref[...]                     # (N, C) f32
    inv_hw = 1.0 / hw
    inv_nm1 = 1.0 / max(hw - 1, 1)         # torch.var default is unbiased (ddof=1)

    mean_in = s * inv_hw
    # Single-pass unbiased instance variance; clamp tiny negative f32
    # cancellation error (torch's two-pass var is >= 0 by construction).
    var_in = jnp.maximum((q - s * s * inv_hw) * inv_nm1, 0.0)
    temp = var_in + mean_in * mean_in

    mean_ln = jnp.mean(mean_in, axis=1, keepdims=True)            # (N, 1)
    var_ln = jnp.mean(temp, axis=1, keepdims=True) - mean_ln * mean_ln
    mean_bn = jnp.mean(mean_in, axis=0, keepdims=True)            # (1, C)
    var_bn = jnp.mean(temp, axis=0, keepdims=True) - mean_bn * mean_bn

    # Softmax weights are pre-normalized in the wrapper; scalars read from SMEM.
    mean = mw_ref[0] * mean_in + mw_ref[1] * mean_ln + mw_ref[2] * mean_bn
    var = vw_ref[0] * var_in + vw_ref[1] * var_ln + vw_ref[2] * var_bn

    inv_std = jax.lax.rsqrt(var + eps)
    scale = gamma_ref[...] * inv_std                              # (N, C)
    shift = beta_ref[...] - mean * scale                          # (N, C)

    scale_ref[...] = scale
    shift_ref[...] = shift
    mean_bn_ref[...] = mean_bn
    var_bn_ref[...] = var_bn


# -------------------------------------------------------------- pass 3: normalize
def _normalize_kernel(scale_ref, shift_ref, x_ref, o_ref):
    """out = x * scale + shift  (single FMA per element, lane-dense stores)."""
    x = x_ref[...].astype(jnp.float32)
    y = x * scale_ref[...] + shift_ref[...]
    o_ref[...] = y.astype(o_ref.dtype)


def switch_norm_2d(x, weight, bias, mean_weight, var_weight,
                   running_mean, running_var, eps=1e-5, momentum=0.9):
    """Training-mode SwitchNorm2d forward (using_bn=True, moving average)."""
    # TODO(synk): eval-mode path (mean_bn/var_bn taken from running buffers) and
    # the using_moving_average=False cumulative update are not wired in; only
    # the training-mode forward with the moving-average update is implemented.
    N, C, H, W = x.shape
    HW = H * W
    R = N * C

    # ---- tile sizes: blocks capped around ~2 MiB, lane-dense where possible --
    HW_CAP = 2048                                   # lanes per block
    hw_tile = HW if HW <= HW_CAP else HW_CAP        # full dim OR multiple of 128
    grid_hw = pl.cdiv(HW, hw_tile)

    budget_rows = max(8, ((2 * 1024 * 1024 // 4) // hw_tile) // 8 * 8)
    row_cap = min(1024, budget_rows)
    row_tile = R if R <= row_cap else row_cap       # full dim OR multiple of 8
    grid_r = pl.cdiv(R, row_tile)

    xr = x.reshape(R, HW)
    grid = (grid_r, grid_hw)

    cp_stats = pltpu.CompilerParams(
        dimension_semantics=("parallel", "arbitrary"),
        vmem_limit_bytes=32 * 1024 * 1024)
    cp_norm = pltpu.CompilerParams(
        dimension_semantics=("parallel", "parallel"),
        vmem_limit_bytes=32 * 1024 * 1024)

    # ---------------- pass 1: per-(n,c) sum / sumsq, streamed over x ----------
    row_sum, row_sumsq = pl.pallas_call(
        functools.partial(_stats_kernel, hw=HW, hw_tile=hw_tile),
        out_shape=(jax.ShapeDtypeStruct((R, 1), jnp.float32),
                   jax.ShapeDtypeStruct((R, 1), jnp.float32)),
        grid=grid,
        in_specs=[pl.BlockSpec((row_tile, hw_tile), lambda i, j: (i, j))],
        out_specs=(pl.BlockSpec((row_tile, 1), lambda i, j: (i, 0)),
                   pl.BlockSpec((row_tile, 1), lambda i, j: (i, 0))),
        scratch_shapes=[pltpu.VMEM((row_tile, 1), jnp.float32),
                        pltpu.VMEM((row_tile, 1), jnp.float32)],
        compiler_params=cp_stats,
    )(xr)

    # ---------------- pass 2: tiny stats-mixing kernel on (N, C) --------------
    s_nc = row_sum.reshape(N, C)
    q_nc = row_sumsq.reshape(N, C)
    mw = jax.nn.softmax(mean_weight.astype(jnp.float32))
    vw = jax.nn.softmax(var_weight.astype(jnp.float32))
    gamma = weight.reshape(1, C).astype(jnp.float32)
    beta = bias.reshape(1, C).astype(jnp.float32)

    vmem = pl.BlockSpec(memory_space=pltpu.MemorySpace.VMEM)
    smem = pl.BlockSpec(memory_space=pltpu.MemorySpace.SMEM)
    scale, shift, mean_bn, var_bn = pl.pallas_call(
        functools.partial(_mix_kernel, hw=HW, eps=eps),
        out_shape=(jax.ShapeDtypeStruct((N, C), jnp.float32),
                   jax.ShapeDtypeStruct((N, C), jnp.float32),
                   jax.ShapeDtypeStruct((1, C), jnp.float32),
                   jax.ShapeDtypeStruct((1, C), jnp.float32)),
        in_specs=[vmem, vmem, smem, smem, vmem, vmem],
        out_specs=(vmem, vmem, vmem, vmem),
    )(s_nc, q_nc, mw, vw, gamma, beta)

    # ---------------- pass 3: streaming normalize + affine FMA ----------------
    scale_r = scale.reshape(R, 1)
    shift_r = shift.reshape(R, 1)

    out = pl.pallas_call(
        _normalize_kernel,
        out_shape=jax.ShapeDtypeStruct((R, HW), x.dtype),
        grid=grid,
        in_specs=[pl.BlockSpec((row_tile, 1), lambda i, j: (i, 0)),
                  pl.BlockSpec((row_tile, 1), lambda i, j: (i, 0)),
                  pl.BlockSpec((row_tile, hw_tile), lambda i, j: (i, j))],
        out_specs=pl.BlockSpec((row_tile, hw_tile), lambda i, j: (i, j)),
        compiler_params=cp_norm,
    )(scale_r, shift_r, xr)

    out = out.reshape(N, C, H, W)

    # running-buffer update (using_moving_average=True; SwitchNorm convention:
    # keep `momentum` fraction of the old value — inverted vs nn.BatchNorm2d)
    mean_bn3 = mean_bn.reshape(1, C, 1)
    var_bn3 = var_bn.reshape(1, C, 1)
    new_running_mean = momentum * running_mean + (1.0 - momentum) * mean_bn3
    new_running_var = momentum * running_var + (1.0 - momentum) * var_bn3
    return out, new_running_mean, new_running_var


def _reference_forward(x, weight, bias, mean_weight, var_weight, eps):
    """Pure-JAX replica of the PyTorch forward (training mode)."""
    N, C, H, W = x.shape
    xr = x.reshape(N, C, -1)
    mean_in = xr.mean(-1, keepdims=True)
    var_in = xr.var(-1, ddof=1, keepdims=True)
    mean_ln = mean_in.mean(1, keepdims=True)
    temp = var_in + mean_in ** 2
    var_ln = temp.mean(1, keepdims=True) - mean_ln ** 2
    mean_bn = mean_in.mean(0, keepdims=True)
    var_bn = temp.mean(0, keepdims=True) - mean_bn ** 2
    mw = jax.nn.softmax(mean_weight)
    vw = jax.nn.softmax(var_weight)
    mean = mw[0] * mean_in + mw[1] * mean_ln + mw[2] * mean_bn
    var = vw[0] * var_in + vw[1] * var_ln + vw[2] * var_bn
    xn = (xr - mean) / jnp.sqrt(var + eps)
    xn = xn.reshape(N, C, H, W)
    return xn * weight + bias


if __name__ == "__main__":
    key = jax.random.PRNGKey(0)
    N, C, H, W = 2, 4, 16, 16
    x = jax.random.normal(key, (N, C, H, W), dtype=jnp.float32)

    # deterministic parameter init, mirroring SwitchNorm2d.reset_parameters
    weight = jnp.ones((1, C, 1, 1), dtype=jnp.float32)       # gamma
    bias = jnp.zeros((1, C, 1, 1), dtype=jnp.float32)        # beta
    mean_weight = jnp.ones((3,), dtype=jnp.float32)
    var_weight = jnp.ones((3,), dtype=jnp.float32)
    running_mean = jnp.zeros((1, C, 1), dtype=jnp.float32)
    running_var = jnp.zeros((1, C, 1), dtype=jnp.float32)

    out, new_rm, new_rv = switch_norm_2d(
        x, weight, bias, mean_weight, var_weight, running_mean, running_var,
        eps=1e-5, momentum=0.9)
    out = jax.block_until_ready(out)

    ref = _reference_forward(x, weight, bias, mean_weight, var_weight, 1e-5)
    assert out.shape == (N, C, H, W)
    assert out.dtype == x.dtype
    assert jnp.allclose(out, ref, rtol=1e-4, atol=1e-4), "mismatch vs JAX reference"

    print("KERNEL_OK")
</pallas_src>

<mosaic_0001>
module attributes {stable_mosaic.version = 11 : i64} {
  func.func @_stats_kernel(%arg0: i32, %arg1: i32, %arg2: memref<8x256xf32, #tpu.memory_space<vmem>>, %arg3: memref<8x1xf32, #tpu.memory_space<vmem>>, %arg4: memref<8x1xf32, #tpu.memory_space<vmem>>, %arg5: memref<8x1xf32, #tpu.memory_space<vmem>>, %arg6: memref<8x1xf32, #tpu.memory_space<vmem>>) attributes {dimension_semantics = [#tpu.dimension_semantics<parallel>, #tpu.dimension_semantics<arbitrary>], iteration_bounds = array<i64: 1, 1>, scalar_prefetch = 0 : i64, scratch_operands = 2 : i64, tpu.core_type = #tpu.core_type<tc>, window_params = [{transform_indices = @transform_0, window_bounds = array<i64: 8, 256>}, {transform_indices = @transform_1, window_bounds = array<i64: 8, 1>}, {transform_indices = @transform_2, window_bounds = array<i64: 8, 1>}]} {
    %c0_i32 = arith.constant 0 : i32
    %0 = arith.cmpi eq, %arg1, %c0_i32 : i32
    %1 = arith.extui %0 : i1 to i32
    %c0_i32_0 = arith.constant 0 : i32
    %2 = arith.cmpi ne, %1, %c0_i32_0 : i32
    scf.if %2 {
      %cst_13 = arith.constant 0.000000e+00 : f32
      %18 = vector.broadcast %cst_13 : f32 to vector<8x1xf32>
      %c0_14 = arith.constant 0 : index
      %c0_15 = arith.constant 0 : index
      %19 = vector.load %arg5[%c0_14, %c0_15] : memref<8x1xf32, #tpu.memory_space<vmem>>, vector<8x1xf32>
      tpu.vector_store %arg5[%c0_14, %c0_15], %18 {strides = array<i32>} : memref<8x1xf32, #tpu.memory_space<vmem>>, vector<8x1xf32>,
      %cst_16 = arith.constant 0.000000e+00 : f32
      %20 = vector.broadcast %cst_16 : f32 to vector<8x1xf32>
      %c0_17 = arith.constant 0 : index
      %c0_18 = arith.constant 0 : index
      %21 = vector.load %arg6[%c0_17, %c0_18] : memref<8x1xf32, #tpu.memory_space<vmem>>, vector<8x1xf32>
      tpu.vector_store %arg6[%c0_17, %c0_18], %20 {strides = array<i32>} : memref<8x1xf32, #tpu.memory_space<vmem>>, vector<8x1xf32>,
    } else {
    }
    %c0 = arith.constant 0 : index
    %c0_1 = arith.constant 0 : index
    %3 = vector.load %arg2[%c0, %c0_1] : memref<8x256xf32, #tpu.memory_space<vmem>>, vector<8x256xf32>
    %c0_2 = arith.constant 0 : index
    %c0_3 = arith.constant 0 : index
    %4 = vector.load %arg5[%c0_2, %c0_3] : memref<8x1xf32, #tpu.memory_space<vmem>>, vector<8x1xf32>
    %cst = arith.constant dense<0.000000e+00> : vector<8xf32>
    %5 = vector.multi_reduction <add>, %3, %cst [1] : vector<8x256xf32> to vector<8xf32>
    %6 = vector.shape_cast %5 : vector<8xf32> to vector<8x1xf32>
    %7 = arith.addf %4, %6 : vector<8x1xf32>
    %c0_4 = arith.constant 0 : index
    %c0_5 = arith.constant 0 : index
    %8 = vector.load %arg5[%c0_4, %c0_5] : memref<8x1xf32, #tpu.memory_space<vmem>>, vector<8x1xf32>
    tpu.vector_store %arg5[%c0_4, %c0_5], %7 {strides = array<i32>} : memref<8x1xf32, #tpu.memory_space<vmem>>, vector<8x1xf32>,
    %c0_6 = arith.constant 0 : index
    %c0_7 = arith.constant 0 : index
    %9 = vector.load %arg6[%c0_6, %c0_7] : memref<8x1xf32, #tpu.memory_space<vmem>>, vector<8x1xf32>
    %10 = arith.mulf %3, %3 : vector<8x256xf32>
    %cst_8 = arith.constant dense<0.000000e+00> : vector<8xf32>
    %11 = vector.multi_reduction <add>, %10, %cst_8 [1] : vector<8x256xf32> to vector<8xf32>
    %12 = vector.shape_cast %11 : vector<8xf32> to vector<8x1xf32>
    %13 = arith.addf %9, %12 : vector<8x1xf32>
    %c0_9 = arith.constant 0 : index
    %c0_10 = arith.constant 0 : index
    %14 = vector.load %arg6[%c0_9, %c0_10] : memref<8x1xf32, #tpu.memory_space<vmem>>, vector<8x1xf32>
    tpu.vector_store %arg6[%c0_9, %c0_10], %13 {strides = array<i32>} : memref<8x1xf32, #tpu.memory_space<vmem>>, vector<8x1xf32>,
    %c0_i32_11 = arith.constant 0 : i32
    %15 = arith.cmpi eq, %arg1, %c0_i32_11 : i32
    %16 = arith.extui %15 : i1 to i32
    %c0_i32_12 = arith.constant 0 : i32
    %17 = arith.cmpi ne, %16, %c0_i32_12 : i32
    scf.if %17 {
      %c0_13 = arith.constant 0 : index
      %c0_14 = arith.constant 0 : index
      %18 = vector.load %arg5[%c0_13, %c0_14] : memref<8x1xf32, #tpu.memory_space<vmem>>, vector<8x1xf32>
      %c0_15 = arith.constant 0 : index
      %c0_16 = arith.constant 0 : index
      %19 = vector.load %arg3[%c0_15, %c0_16] : memref<8x1xf32, #tpu.memory_space<vmem>>, vector<8x1xf32>
      tpu.vector_store %arg3[%c0_15, %c0_16], %18 {strides = array<i32>} : memref<8x1xf32, #tpu.memory_space<vmem>>, vector<8x1xf32>,
      %c0_17 = arith.constant 0 : index
      %c0_18 = arith.constant 0 : index
      %20 = vector.load %arg6[%c0_17, %c0_18] : memref<8x1xf32, #tpu.memory_space<vmem>>, vector<8x1xf32>
      %c0_19 = arith.constant 0 : index
      %c0_20 = arith.constant 0 : index
      %21 = vector.load %arg4[%c0_19, %c0_20] : memref<8x1xf32, #tpu.memory_space<vmem>>, vector<8x1xf32>
      tpu.vector_store %arg4[%c0_19, %c0_20], %20 {strides = array<i32>} : memref<8x1xf32, #tpu.memory_space<vmem>>, vector<8x1xf32>,
    } else {
    }
    return
  }
  func.func @transform_0(%arg0: i32, %arg1: i32) -> (i32, i32) {
    %c0_i32 = arith.constant 0 : i32
    return %arg0, %arg1 : i32, i32
  }
  func.func @transform_1(%arg0: i32, %arg1: i32) -> (i32, i32) {
    %c0_i32 = arith.constant 0 : i32
    %c0_i32_0 = arith.constant 0 : i32
    return %arg0, %c0_i32 : i32, i32
  }
  func.func @transform_2(%arg0: i32, %arg1: i32) -> (i32, i32) {
    %c0_i32 = arith.constant 0 : i32
    %c0_i32_0 = arith.constant 0 : i32
    return %arg0, %c0_i32 : i32, i32
  }
}

</mosaic_0001>

<bundles_post_ra>
// kernel: tpu_custom_call.1
= control target key start
LH: loop header
LB: loop body
LE: loop exit
PB: predicated region body
PF: predicated region fallthrough
CT: control target
= control target key end

     0   :  { %8 = vsyncpa [#allocation5], 0  ;;  %s92_s12 = smov [#allocation4]   ;;  %s124_s0 = inlined_call_operand.hbm [shape: f32[8,256], index: 0, kind: input, shape index: {}]   ;;  %s125_s1 = inlined_call_operand.vmem [shape: f32[8,1], index: 1, kind: output, shape index: {0}]   ;;  %s126_s2 = inlined_call_operand.vmem [shape: f32[8,1], index: 2, kind: output, shape index: {1}]  }
   0x1   :  { %s14_s11 = sshll.u32 %s124_s0, 4  ;;  %s16_s13 = sshll.u32 %s92_s12, 4  ;;  %s15_s11 = int_to_ptr.hbm [resolvable:$true] %s14_s11  ;;  %s17_s13 = int_to_ptr.vmem [resolvable:$true] %s16_s13 }
   0x2   :  { %19 = dma.hbm_to_vmem [thread:$0]  %s15_s11, 256, %s17_s13, [#allocation5]  }
   0x3   :  { %90 = dma.done.wait [#allocation5], 256  }
   0x4   :  { %91 = vsyncadd [#allocation5], 4294967040  ;;  %vm28_vm0 = vcmask 7168   ;;  %v93_v0 = vmov 0.0   ;;  %v31_v1 = vld [vmem:[#allocation4] sm:$0xff]  ;;  %v32_v2 = vld [vmem:[#allocation4 + $0x8] sm:$0xff] }
   0x5   :  { %29 = vst.msk [vmem:[#allocation2] sm:$0xff] %vm28_vm0, %v93_v0  ;;  %v34_v3 = vadd.f32 %v32_v2, %v31_v1  ;;  %v41_v4 = vmul.f32 %v31_v1, %v31_v1  ;;  %v42_v5 = vmul.f32 %v32_v2, %v32_v2 }
   0x6   :  { %30 = vst.msk [vmem:[#allocation3] sm:$0xff] %vm28_vm0, %v93_v0 }
   0x7   :  { %35 = vadd.xlane.f32.xlu0 %v34_v3  ;;  %v43_v6 = vadd.f32 %v42_v5, %v41_v4 }
   0xc   :  { %v33_v7 = vld [vmem:[#allocation2] sm:$0xff] }
   0xd   :  { %v40_v10 = vld [vmem:[#allocation3] sm:$0xff] }
   0xf   :  { %44 = vadd.xlane.f32.xlu0 %v43_v6 }
  0x7a   :  { %v36_v8 = vpop.xlane.xlu0 %35 }
  0x7b   :  { %v37_v9 = vadd.f32 %v36_v8, %v33_v7 }
  0x7d   :  { %39 = vst.msk [vmem:[#allocation2] sm:$0xff] %vm28_vm0, %v37_v9 }
  0x82   :  { %v45_v11 = vpop.xlane.xlu0 %44 }
  0x83   :  { %v46_v12 = vadd.f32 %v45_v11, %v40_v10 }
  0x84   :  { %v51_v13 = vld [vmem:[#allocation2] sm:$0xff] }
  0x85   :  { %52 = vst.msk [vmem:[%s125_s1] sm:$0xff] %vm28_vm0, %v51_v13 }
  0x86   :  { %47 = vst.msk [vmem:[#allocation3] sm:$0xff] %vm28_vm0, %v46_v12 }
  0x8d   :  { %v53_v14 = vld [vmem:[#allocation3] sm:$0xff] }
  0x8e   :  { %54 = vst.msk [vmem:[%s126_s2] sm:$0xff] %vm28_vm0, %v53_v14 }
  0x8f   :  { %63 = vsyncpa [#allocation5], 1 }

</bundles_post_ra>
